<compile_context>
chip_gen: v5e
topology: v5e:2x2
jax: 0.10.0
libtpu: 0.0.40
codegen_flags: <defaults>
</compile_context>

<pallas_src>
import jax
import jax.numpy as jnp
from jax.experimental import pallas as pl
from jax.experimental.pallas import tpu as pltpu

# ----- model dimensions -----
LATENT = 32    # latent_dim
NCLS = 4       # num_classes (n_cond)
H1 = 64        # layer_sizes[1]  (FirstL out / dec_latent width)
H2 = 96        # hidden layer out
OUT = 128      # output dim
KPAD = 128     # lane-aligned fused input slab width: [z | onehot | zero-pad]
LATPAD = 128   # lane-dense dec_latent output slab width (first H1 cols valid)
LN_EPS = 1e-5  # PyTorch LayerNorm default eps


def _layernorm_no_affine(x):
    mu = jnp.mean(x, axis=-1, keepdims=True)
    var = jnp.mean((x - mu) ** 2, axis=-1, keepdims=True)
    return (x - mu) * jax.lax.rsqrt(var + LN_EPS)


def decoder_kernel(x_ref, w1_ref, w2_ref, w3_ref, b3_ref, mean_ref, lat_ref):
    """Fused Decoder forward for one batch-row tile.

    x_ref   : (TM, KPAD)   fused [z | one-hot(batch) | zeros] slab
    w1_ref  : (KPAD, H1)   fused [expr_L.W^T ; cond_L.W^T ; zeros] (bias=False)
    w2_ref  : (H1, H2)     HiddenL.L1.weight^T (bias=False)
    w3_ref  : (H2, OUT)    mean_decoder Linear weight^T
    b3_ref  : (1, OUT)     mean_decoder Linear bias
    mean_ref: (TM, OUT)    dec_mean_gamma (softmax output)
    lat_ref : (TM, LATPAD) dec_latent, lane-dense (first H1 columns valid)
    """
    x = x_ref[...]

    # FirstL: CondLayers (single lane-aligned matmul) -> LayerNorm -> ReLU
    h = jnp.dot(x, w1_ref[...], preferred_element_type=jnp.float32)   # (TM, H1)
    h = _layernorm_no_affine(h)
    h = jnp.maximum(h, 0.0)

    # lane-dense 128-wide store; caller slices [:, :H1]
    pad = jnp.zeros((h.shape[0], LATPAD - H1), dtype=h.dtype)
    lat_ref[...] = jnp.concatenate([h, pad], axis=-1)

    # HiddenL: Linear(no bias) -> LayerNorm -> ReLU
    g = jnp.dot(h, w2_ref[...], preferred_element_type=jnp.float32)   # (TM, H2)
    g = _layernorm_no_affine(g)
    g = jnp.maximum(g, 0.0)

    # mean_decoder: Linear(+bias) -> Softmax(dim=-1)
    logits = jnp.dot(g, w3_ref[...], preferred_element_type=jnp.float32) + b3_ref[...]
    m = jnp.max(logits, axis=-1, keepdims=True)
    e = jnp.exp(logits - m)
    # Exact division keeps the 1e-5 tolerance; for throughput use
    # pl.reciprocal(jnp.sum(e, ...), approx=True) (EUP slot).
    mean_ref[...] = e / jnp.sum(e, axis=-1, keepdims=True)


def init_params(key):
    """Deterministic init mimicking PyTorch nn.Linear U(-1/sqrt(fan_in), ...).
    Weights stored pre-transposed as (in_features, out_features)."""
    k1, k2, k3, k4, k5 = jax.random.split(key, 5)

    def uni(k, shape, fan_in):
        bound = 1.0 / jnp.sqrt(float(fan_in))
        return jax.random.uniform(k, shape, jnp.float32, -bound, bound)

    w1e = uni(k1, (LATENT, H1), LATENT)   # CondLayers.expr_L (bias=False)
    w1c = uni(k2, (NCLS, H1), NCLS)       # CondLayers.cond_L (bias=False)
    # Fused, lane-aligned FirstL weight: [w1e ; w1c ; zero rows] -> (128, 64)
    w1_fused = jnp.concatenate(
        [w1e, w1c, jnp.zeros((KPAD - LATENT - NCLS, H1), jnp.float32)], axis=0)

    return {
        "w1e": w1e,
        "w1c": w1c,
        "w1_fused": w1_fused,
        "w2": uni(k3, (H1, H2), H1),      # HiddenL.L1 (bias=False)
        "w3": uni(k4, (H2, OUT), H2),     # mean_decoder Linear weight
        "b3": uni(k5, (1, OUT), H2),      # mean_decoder Linear bias
    }


def decoder_forward(z, batch_ccPairs, params, *, tm=8):
    """Equivalent of Decoder.forward(z, batch_ccPairs=..., use_decoder='ccPairs')
    with recon_loss='nb' -> returns (dec_mean_gamma, dec_latent).

    tm: batch-row tile (multiple of 8).  8 is fine for tiny tests; use 128
    (v5e) / 256+ (v6e, v7x) for large batches so MXU rows are filled.
    """
    B = z.shape[0]
    z = z.astype(jnp.float32)
    cond = jax.nn.one_hot(batch_ccPairs, NCLS, dtype=jnp.float32)
    # Fused lane-aligned input slab: [z | onehot | zero-pad] -> (B, 128).
    # (torch.cat + CondLayers' torch.split is folded into one matmul.)
    x = jnp.concatenate(
        [z, cond, jnp.zeros((B, KPAD - LATENT - NCLS), jnp.float32)], axis=-1)

    # Pad batch rows up to a multiple of tm (padded rows are harmless:
    # LayerNorm/softmax of zeros stay finite and are sliced off below).
    bp = ((B + tm - 1) // tm) * tm
    if bp != B:
        x = jnp.pad(x, ((0, bp - B), (0, 0)))
    grid = (bp // tm,)

    out_shapes = (
        jax.ShapeDtypeStruct((bp, OUT), jnp.float32),     # dec_mean_gamma
        jax.ShapeDtypeStruct((bp, LATPAD), jnp.float32),  # dec_latent (padded)
    )
    mean, lat = pl.pallas_call(
        decoder_kernel,
        out_shape=out_shapes,
        grid=grid,
        in_specs=[
            # activations: tiled over batch rows (auto double-buffered)
            pl.BlockSpec((tm, KPAD), lambda i: (i, 0)),
            # weights/bias: constant block index -> loaded once, VMEM-resident
            pl.BlockSpec((KPAD, H1), lambda i: (0, 0)),
            pl.BlockSpec((H1, H2), lambda i: (0, 0)),
            pl.BlockSpec((H2, OUT), lambda i: (0, 0)),
            pl.BlockSpec((1, OUT), lambda i: (0, 0)),
        ],
        out_specs=(
            pl.BlockSpec((tm, OUT), lambda i: (i, 0)),
            pl.BlockSpec((tm, LATPAD), lambda i: (i, 0)),
        ),
        compiler_params=pltpu.CompilerParams(
            dimension_semantics=("parallel",)),
    )(x, params["w1_fused"], params["w2"], params["w3"], params["b3"])

    return mean[:B], lat[:B, :H1]


def decoder_reference(z, batch_ccPairs, params):
    """Pure-JAX reference (unfused) for correctness check."""
    cond = jax.nn.one_hot(batch_ccPairs, NCLS, dtype=jnp.float32)
    h = z @ params["w1e"] + cond @ params["w1c"]
    h = jnp.maximum(_layernorm_no_affine(h), 0.0)
    dec_latent = h
    g = jnp.maximum(_layernorm_no_affine(h @ params["w2"]), 0.0)
    logits = g @ params["w3"] + params["b3"]
    return jax.nn.softmax(logits, axis=-1), dec_latent


if __name__ == "__main__":
    key = jax.random.PRNGKey(0)
    kz, kb, kp = jax.random.split(key, 3)

    B = 16    # small test batch; grid of 2 tiles at tm=8
    z = jax.random.normal(kz, (B, LATENT), dtype=jnp.float32)
    batch_ccPairs = jax.random.randint(kb, (B,), 0, NCLS)
    params = init_params(kp)

    mean, dec_latent = decoder_forward(z, batch_ccPairs, params, tm=8)
    jax.block_until_ready((mean, dec_latent))

    ref_mean, ref_latent = decoder_reference(z, batch_ccPairs, params)
    assert mean.shape == (B, OUT) and dec_latent.shape == (B, H1)
    assert jnp.allclose(mean, ref_mean, rtol=1e-5, atol=1e-5)
    assert jnp.allclose(dec_latent, ref_latent, rtol=1e-5, atol=1e-5)

    # TODO(synk): Dropout (use_dr=True) and BatchNorm (use_bn=True) branches
    # are not implemented; configuration uses use_ln=True / use_dr=False
    # (eval-mode semantics).
    print("KERNEL_OK")
</pallas_src>

<mosaic_0001>
module attributes {stable_mosaic.version = 11 : i64} {
  func.func @decoder_kernel(%arg0: i32, %arg1: memref<8x128xf32, #tpu.memory_space<vmem>>, %arg2: memref<128x64xf32, #tpu.memory_space<vmem>>, %arg3: memref<64x96xf32, #tpu.memory_space<vmem>>, %arg4: memref<96x128xf32, #tpu.memory_space<vmem>>, %arg5: memref<1x128xf32, #tpu.memory_space<vmem>>, %arg6: memref<8x128xf32, #tpu.memory_space<vmem>>, %arg7: memref<8x128xf32, #tpu.memory_space<vmem>>) attributes {dimension_semantics = [#tpu.dimension_semantics<parallel>], iteration_bounds = array<i64: 2>, scalar_prefetch = 0 : i64, scratch_operands = 0 : i64, tpu.core_type = #tpu.core_type<tc>, window_params = [{transform_indices = @transform_0, window_bounds = array<i64: 8, 128>}, {pipeline_mode = #tpu.pipeline_mode<synchronous>, transform_indices = @transform_1, window_bounds = array<i64: 128, 64>}, {pipeline_mode = #tpu.pipeline_mode<synchronous>, transform_indices = @transform_2, window_bounds = array<i64: 64, 96>}, {pipeline_mode = #tpu.pipeline_mode<synchronous>, transform_indices = @transform_3, window_bounds = array<i64: 96, 128>}, {pipeline_mode = #tpu.pipeline_mode<synchronous>, transform_indices = @transform_4, window_bounds = array<i64: 1, 128>}, {transform_indices = @transform_5, window_bounds = array<i64: 8, 128>}, {transform_indices = @transform_6, window_bounds = array<i64: 8, 128>}]} {
    %c0 = arith.constant 0 : index
    %c0_0 = arith.constant 0 : index
    %0 = vector.load %arg1[%c0, %c0_0] : memref<8x128xf32, #tpu.memory_space<vmem>>, vector<8x128xf32>
    %c0_1 = arith.constant 0 : index
    %c0_2 = arith.constant 0 : index
    %1 = vector.load %arg2[%c0_1, %c0_2] : memref<128x64xf32, #tpu.memory_space<vmem>>, vector<128x64xf32>
    %cst = arith.constant dense<0.000000e+00> : vector<8x64xf32>
    %2 = tpu.matmul %0, %1, %cst {dimension_numbers = #tpu.dot_dimension_numbers<[1], [0], [0], [1], [0, 0, 1, 1], [], []>} : vector<8x128xf32>, vector<128x64xf32>, vector<8x64xf32> -> vector<8x64xf32>
    %cst_3 = arith.constant dense<0.000000e+00> : vector<8xf32>
    %3 = vector.multi_reduction <add>, %2, %cst_3 [1] : vector<8x64xf32> to vector<8xf32>
    %4 = vector.shape_cast %3 : vector<8xf32> to vector<8x1xf32>
    %cst_4 = arith.constant 6.400000e+01 : f32
    %5 = vector.broadcast %cst_4 : f32 to vector<8x1xf32>
    %6 = arith.divf %4, %5 : vector<8x1xf32>
    %7 = vector.broadcast %6 : vector<8x1xf32> to vector<8x64xf32>
    %8 = arith.subf %2, %7 : vector<8x64xf32>
    %9 = arith.mulf %8, %8 : vector<8x64xf32>
    %cst_5 = arith.constant dense<0.000000e+00> : vector<8xf32>
    %10 = vector.multi_reduction <add>, %9, %cst_5 [1] : vector<8x64xf32> to vector<8xf32>
    %11 = vector.shape_cast %10 : vector<8xf32> to vector<8x1xf32>
    %cst_6 = arith.constant 6.400000e+01 : f32
    %12 = vector.broadcast %cst_6 : f32 to vector<8x1xf32>
    %13 = arith.divf %11, %12 : vector<8x1xf32>
    %14 = vector.broadcast %6 : vector<8x1xf32> to vector<8x64xf32>
    %15 = arith.subf %2, %14 : vector<8x64xf32>
    %cst_7 = arith.constant 9.99999974E-6 : f32
    %16 = vector.broadcast %cst_7 : f32 to vector<8x1xf32>
    %17 = arith.addf %13, %16 : vector<8x1xf32>
    %18 = math.rsqrt %17 : vector<8x1xf32>
    %19 = vector.broadcast %18 : vector<8x1xf32> to vector<8x64xf32>
    %20 = arith.mulf %15, %19 : vector<8x64xf32>
    %cst_8 = arith.constant 0.000000e+00 : f32
    %21 = vector.broadcast %cst_8 : f32 to vector<8x64xf32>
    %22 = arith.maximumf %20, %21 : vector<8x64xf32>
    %cst_9 = arith.constant 0.000000e+00 : f32
    %23 = vector.broadcast %cst_9 : f32 to vector<8x64xf32>
    %24 = tpu.concatenate %22, %23 in 1 : vector<8x64xf32>, vector<8x64xf32> -> vector<8x128xf32>
    %c0_10 = arith.constant 0 : index
    %c0_11 = arith.constant 0 : index
    %25 = vector.load %arg7[%c0_10, %c0_11] : memref<8x128xf32, #tpu.memory_space<vmem>>, vector<8x128xf32>
    tpu.vector_store %arg7[%c0_10, %c0_11], %24 {strides = array<i32>} : memref<8x128xf32, #tpu.memory_space<vmem>>, vector<8x128xf32>,
    %c0_12 = arith.constant 0 : index
    %c0_13 = arith.constant 0 : index
    %26 = vector.load %arg3[%c0_12, %c0_13] : memref<64x96xf32, #tpu.memory_space<vmem>>, vector<64x96xf32>
    %cst_14 = arith.constant dense<0.000000e+00> : vector<8x96xf32>
    %27 = tpu.matmul %22, %26, %cst_14 {dimension_numbers = #tpu.dot_dimension_numbers<[1], [0], [0], [1], [0, 0, 1, 1], [], []>} : vector<8x64xf32>, vector<64x96xf32>, vector<8x96xf32> -> vector<8x96xf32>
    %cst_15 = arith.constant dense<0.000000e+00> : vector<8xf32>
    %28 = vector.multi_reduction <add>, %27, %cst_15 [1] : vector<8x96xf32> to vector<8xf32>
    %29 = vector.shape_cast %28 : vector<8xf32> to vector<8x1xf32>
    %cst_16 = arith.constant 9.600000e+01 : f32
    %30 = vector.broadcast %cst_16 : f32 to vector<8x1xf32>
    %31 = arith.divf %29, %30 : vector<8x1xf32>
    %32 = vector.broadcast %31 : vector<8x1xf32> to vector<8x96xf32>
    %33 = arith.subf %27, %32 : vector<8x96xf32>
    %34 = arith.mulf %33, %33 : vector<8x96xf32>
    %cst_17 = arith.constant dense<0.000000e+00> : vector<8xf32>
    %35 = vector.multi_reduction <add>, %34, %cst_17 [1] : vector<8x96xf32> to vector<8xf32>
    %36 = vector.shape_cast %35 : vector<8xf32> to vector<8x1xf32>
    %cst_18 = arith.constant 9.600000e+01 : f32
    %37 = vector.broadcast %cst_18 : f32 to vector<8x1xf32>
    %38 = arith.divf %36, %37 : vector<8x1xf32>
    %39 = vector.broadcast %31 : vector<8x1xf32> to vector<8x96xf32>
    %40 = arith.subf %27, %39 : vector<8x96xf32>
    %cst_19 = arith.constant 9.99999974E-6 : f32
    %41 = vector.broadcast %cst_19 : f32 to vector<8x1xf32>
    %42 = arith.addf %38, %41 : vector<8x1xf32>
    %43 = math.rsqrt %42 : vector<8x1xf32>
    %44 = vector.broadcast %43 : vector<8x1xf32> to vector<8x96xf32>
    %45 = arith.mulf %40, %44 : vector<8x96xf32>
    %cst_20 = arith.constant 0.000000e+00 : f32
    %46 = vector.broadcast %cst_20 : f32 to vector<8x96xf32>
    %47 = arith.maximumf %45, %46 : vector<8x96xf32>
    %c0_21 = arith.constant 0 : index
    %c0_22 = arith.constant 0 : index
    %48 = vector.load %arg4[%c0_21, %c0_22] : memref<96x128xf32, #tpu.memory_space<vmem>>, vector<96x128xf32>
    %cst_23 = arith.constant dense<0.000000e+00> : vector<8x128xf32>
    %49 = tpu.matmul %47, %48, %cst_23 {dimension_numbers = #tpu.dot_dimension_numbers<[1], [0], [0], [1], [0, 0, 1, 1], [], []>} : vector<8x96xf32>, vector<96x128xf32>, vector<8x128xf32> -> vector<8x128xf32>
    %c0_24 = arith.constant 0 : index
    %c0_25 = arith.constant 0 : index
    %50 = vector.load %arg5[%c0_24, %c0_25] : memref<1x128xf32, #tpu.memory_space<vmem>>, vector<1x128xf32>
    %51 = vector.broadcast %50 : vector<1x128xf32> to vector<8x128xf32>
    %52 = arith.addf %49, %51 : vector<8x128xf32>
    %cst_26 = arith.constant dense<0xFF800000> : vector<8xf32>
    %53 = vector.multi_reduction <maximumf>, %52, %cst_26 [1] : vector<8x128xf32> to vector<8xf32>
    %54 = vector.shape_cast %53 : vector<8xf32> to vector<8x1xf32>
    %55 = vector.broadcast %54 : vector<8x1xf32> to vector<8x128xf32>
    %56 = arith.subf %52, %55 : vector<8x128xf32>
    %57 = math.exp %56 : vector<8x128xf32>
    %cst_27 = arith.constant dense<0.000000e+00> : vector<8xf32>
    %58 = vector.multi_reduction <add>, %57, %cst_27 [1] : vector<8x128xf32> to vector<8xf32>
    %59 = vector.shape_cast %58 : vector<8xf32> to vector<8x1xf32>
    %60 = vector.broadcast %59 : vector<8x1xf32> to vector<8x128xf32>
    %61 = arith.divf %57, %60 : vector<8x128xf32>
    %c0_28 = arith.constant 0 : index
    %c0_29 = arith.constant 0 : index
    %62 = vector.load %arg6[%c0_28, %c0_29] : memref<8x128xf32, #tpu.memory_space<vmem>>, vector<8x128xf32>
    tpu.vector_store %arg6[%c0_28, %c0_29], %61 {strides = array<i32>} : memref<8x128xf32, #tpu.memory_space<vmem>>, vector<8x128xf32>,
    return
  }
  func.func @transform_0(%arg0: i32) -> (i32, i32) {
    %c0_i32 = arith.constant 0 : i32
    %c0_i32_0 = arith.constant 0 : i32
    return %arg0, %c0_i32 : i32, i32
  }
  func.func @transform_1(%arg0: i32) -> (i32, i32) {
    %c0_i32 = arith.constant 0 : i32
    %c0_i32_0 = arith.constant 0 : i32
    %c0_i32_1 = arith.constant 0 : i32
    return %c0_i32, %c0_i32_0 : i32, i32
  }
  func.func @transform_2(%arg0: i32) -> (i32, i32) {
    %c0_i32 = arith.constant 0 : i32
    %c0_i32_0 = arith.constant 0 : i32
    %c0_i32_1 = arith.constant 0 : i32
    return %c0_i32, %c0_i32_0 : i32, i32
  }
  func.func @transform_3(%arg0: i32) -> (i32, i32) {
    %c0_i32 = arith.constant 0 : i32
    %c0_i32_0 = arith.constant 0 : i32
    %c0_i32_1 = arith.constant 0 : i32
    return %c0_i32, %c0_i32_0 : i32, i32
  }
  func.func @transform_4(%arg0: i32) -> (i32, i32) {
    %c0_i32 = arith.constant 0 : i32
    %c0_i32_0 = arith.constant 0 : i32
    %c0_i32_1 = arith.constant 0 : i32
    return %c0_i32, %c0_i32_0 : i32, i32
  }
  func.func @transform_5(%arg0: i32) -> (i32, i32) {
    %c0_i32 = arith.constant 0 : i32
    %c0_i32_0 = arith.constant 0 : i32
    return %arg0, %c0_i32 : i32, i32
  }
  func.func @transform_6(%arg0: i32) -> (i32, i32) {
    %c0_i32 = arith.constant 0 : i32
    %c0_i32_0 = arith.constant 0 : i32
    return %arg0, %c0_i32 : i32, i32
  }
}

</mosaic_0001>

<bundles_post_ra>
// kernel: tpu_custom_call.1
= control target key start
LH: loop header
LB: loop body
LE: loop exit
PB: predicated region body
PF: predicated region fallthrough
CT: control target
= control target key end

     0   :  { %s1019_s0 = inlined_call_operand.vmem [shape: f32[16,128], index: 0, kind: input, shape index: {}]   ;;  %s1020_s1 = inlined_call_operand.vmem [shape: f32[128,64], index: 1, kind: input, shape index: {}]   ;;  %s1021_s2 = inlined_call_operand.vmem [shape: f32[64,96], index: 2, kind: input, shape index: {}]   ;;  %s1022_s3 = inlined_call_operand.vmem [shape: f32[96,128], index: 3, kind: input, shape index: {}]   ;;  %s1023_s4 = inlined_call_operand.vmem [shape: f32[1,128], index: 4, kind: input, shape index: {}]   ;;  %s1024_s5 = inlined_call_operand.hbm [shape: f32[16,128], index: 5, kind: output, shape index: {0}]   ;;  %s1025_s6 = inlined_call_operand.hbm [shape: f32[16,128], index: 6, kind: output, shape index: {1}]  }
   0x1   :  { %1027 = sst [smem:[#allocation8_spill]] %s1019_s0 }
   0x2   :  { %12 = vsyncpa [#allocation3], 0 }
   0x3   :  { %14 = vsyncpa [#allocation3 + $0x1], 0 }
   0x4   :  { %15 = vsyncpa [#allocation5], 0 }
   0x5   :  { %17 = vsyncpa [#allocation5 + $0x1], 0  ;;  %s786_s21 = smov 0   ;;  %s788_s22 = smov 0  }
   0x6   :  { %s790_s23 = smov 0   ;;  %s792_s24 = smov 0  }
   0x7 LB: > { %s807_s25 = sadd.s32 4294967295, %s747_s24   ;;  %s579_s26 = sadd.s32 4294967294, %s747_s24   ;;  %s747_s24 = sphi %s792_s24, %s1035_s24   ;;  %s743_s23 = sphi %s790_s23, %s1034_s23   ;;  %s739_s22 = sphi %s788_s22, %s1033_s22   ;;  %s735_s21 = sphi %s786_s21, %s1032_s21  }
   0x8   : > { %s811_s27 = sadd.s32 1, %s747_s24   ;;  %s140_s28 = sadd.s32 1, %s743_s23 }
   0x9   : > { %s137_s29 = ssub.s32 %s747_s24, %s811_s27  ;;  %p150_p0 = scmp.ne.s32.totalorder %s743_s23, %s739_s22 }
   0xa   : > { %p138_p1 = scmp.eq.s32.totalorder %s137_s29, 0  ;;  %p151_p2 = scmp.eq.s32.totalorder %s807_s25, 1 }
   0xb   : > { %p156_p3 = scmp.ne.s32.totalorder %s739_s22, %s735_s21  ;;  %p157_p4 = scmp.eq.s32.totalorder %s579_s26, 1 }
   0xc   : > { %s822_s30 = scalar_select %p138_p1, %s743_s23, %s140_s28  }
   0xd   : > { %p824_p5 = por %p151_p2, %p150_p0  ;;  %p828_p6 = por %p157_p4, %p156_p3 }
   0xe   : > { %p582_p7 = scmp.ge.s32.totalorder %s747_s24, 1  ;;  %p220_p8 = scmp.lt.s32.totalorder %s747_s24, 3 }
  0x10   : > { %p221_p9 = pnand %p582_p7, %p220_p8 }
  0x11   : > { %p254_p10 = scmp.lt.s32.totalorder (!%p221_p9), %s807_s25, 1  ;;  %s1030_s0 = sld [smem:[#allocation8_spill]] (!%p221_p9) }
  0x12   : > { %224 = sbr.rel (%p221_p9) target bundleno = 1238 (0x4d6), region = 40  ;;  %s914_s17 = sand.u32 (!%p221_p9), 1, %s739_s22  }
  0x13   : > { %s1026_s18 = sshll.u32 (!%p221_p9), %s914_s17, 3  ;;  %s590_s28 = sshll.u32 (!%p221_p9), %s807_s25, 3 }
  0x14   : > { %s921_s19 = scalar_lea.vmem (!%p221_p9), [#allocation4], %s1026_s18  ;;  %s482_s10 = scalar_lea.hbm (!%p221_p9), %s1025_s6, %s590_s28 }
  0x15   : > { %s484_s11 = sshll.u32 (!%p221_p9), %s921_s19, 4  ;;  %s486_s12 = sshll.u32 (!%p221_p9), %s482_s10, 4  ;;  %s485_s11 = int_to_ptr.vmem [resolvable:$true] %s484_s11  ;;  %s487_s12 = int_to_ptr.hbm [resolvable:$true] %s486_s12 }
  0x16   : > { %s667_s14 = sshra.s32 (!%p221_p9), %s487_s12, 4  ;;  %s668_s14 = int_to_ptr.hbm [resolvable:$true] %s667_s14 }
  0x17   : > { %v274_v0 = vld [vmem:[%s1020_s1 + $0x78] sm:$0xff]  ;;  %v273_v1 = vld [vmem:[%s1020_s1 + $0x70] sm:$0xff]  ;;  %v272_v2 = vld [vmem:[%s1020_s1 + $0x68] sm:$0xff]  ;;  %s255_s16 = scalar_select %p254_p10, %s807_s25, 1  ;;  %vm295_vm0 = vcmask 523264   ;;  %v749_v19 = vmov 64.0  }
  0x18   : > { %275 = vmatpush.msra.mxu0 %v274_v0  ;;  %v271_v3 = vld [vmem:[%s1020_s1 + $0x60] sm:$0xff]  ;;  %v270_v4 = vld [vmem:[%s1020_s1 + $0x58] sm:$0xff]  ;;  %v269_v5 = vld [vmem:[%s1020_s1 + $0x50] sm:$0xff]  ;;  %641 = vrcp.f32 %v749_v19  ;;  %vm359_vm5 = vcmask 785408   ;;  %v750_v54 = vmov 96.0   ;;  %s669_s15 = scalar_lea.hbm %s668_s14, 8  ;;  %p674_p0 = scmp.lt.s32.totalorder %s668_s14, %s1025_s6 }
  0x19   : > { %v268_v6 = vld [vmem:[%s1020_s1 + $0x48] sm:$0xff]  ;;  %v267_v7 = vld [vmem:[%s1020_s1 + $0x40] sm:$0xff]  ;;  %v266_v8 = vld [vmem:[%s1020_s1 + $0x38] sm:$0xff]  ;;  %s585_s26 = sshll.u32 %s255_s16, 3  ;;  %p670_p11 = scmp.ne.s32.totalorder %s668_s14, %s669_s15 }
  0x1a   : > { %276 = vmatpush.msra.mxu0 %v273_v1  ;;  %v265_v9 = vld [vmem:[%s1020_s1 + $0x30] sm:$0xff]  ;;  %v264_v10 = vld [vmem:[%s1020_s1 + $0x28] sm:$0xff]  ;;  %v263_v11 = vld [vmem:[%s1020_s1 + $0x20] sm:$0xff]  ;;  %s257_s13 = scalar_lea.vmem %s1030_s0, %s585_s26  ;;  %s673_s26 = scalar_lea.hbm %s1025_s6, 16 }
  0x1b   : > { %v262_v12 = vld [vmem:[%s1020_s1 + $0x18] sm:$0xff]  ;;  %v261_v13 = vld [vmem:[%s1020_s1 + $0x10] sm:$0xff]  ;;  %v260_v14 = vld [vmem:[%s1020_s1 + $0x8] sm:$0xff]  ;;  %p671_p12 = pnand %p670_p11, %p824_p5  ;;  %p675_p1 = scmp.lt.s32.totalorder %s673_s26, %s669_s15 }
  0x1c   : > { %277 = vmatpush.msra.mxu0 %v272_v2  ;;  %v259_v15 = vld [vmem:[%s1020_s1] sm:$0xff]  ;;  %v335_v31 = vld [vmem:[%s1021_s2 + $0x38] sm:$0xff]  ;;  %v334_v32 = vld [vmem:[%s1021_s2 + $0x30] sm:$0xff] }
  0x1d   : > { %v258_v16 = vld [vmem:[%s257_s13] sm:$0xff]  ;;  %347 = vmatpush.msra.mxu1 %v335_v31  ;;  %v333_v33 = vld [vmem:[%s1021_s2 + $0x28] sm:$0xff]  ;;  %v331_v35 = vld [vmem:[%s1021_s2 + $0x18] sm:$0xff]  ;;  %s458_s13 = scalar_lea.sflag [#allocation5], %s914_s17  ;;  %p672_p13 = pneg %p671_p12 }
  0x1e   : > { %278 = vmatpush.msra.mxu0 %v271_v3  ;;  %v642_v20 = vpop.eup %641  ;;  %v332_v34 = vld [vmem:[%s1021_s2 + $0x20] sm:$0xff]  ;;  %v330_v36 = vld [vmem:[%s1021_s2 + $0x10] sm:$0xff]  ;;  %v329_v37 = vld [vmem:[%s1021_s2 + $0x8] sm:$0xff]  ;;  %p676_p2 = por %p675_p1, %p674_p0 }
  0x1f   : > { %v300_v21 = vmul.f32 64.0, %v642_v20  ;;  %vm304_vm1 = vweird.f32 %v642_v20  ;;  %348 = vmatpush.msra.mxu1 %v334_v32  ;;  %v328_v38 = vld [vmem:[%s1021_s2] sm:$0xff]  ;;  %v401_v2 = vld [vmem:[%s1022_s3 + $0x58] sm:$0xff]  ;;  %v400_v3 = vld [vmem:[%s1022_s3 + $0x50] sm:$0xff] }
  0x20   : > { %279 = vmatpush.msra.mxu0 %v270_v4  ;;  %413 = vmatpush.msra.mxu2 %v401_v2  ;;  %v399_v4 = vld [vmem:[%s1022_s3 + $0x48] sm:$0xff]  ;;  %p677_p3 = pnand %p676_p2, %p672_p13 }
  0x21   : > { %v301_v22 = vsub.f32 1.0, %v300_v21  ;;  %349 = vmatpush.msra.mxu1 %v333_v33 }
  0x22   : > { %280 = vmatpush.msra.mxu0 %v269_v5  ;;  %414 = vmatpush.msra.mxu2 %v400_v3  ;;  %v398_v5 = vld [vmem:[%s1022_s3 + $0x40] sm:$0xff] }
  0x23   : > { %v302_v23 = vmul.f32 %v642_v20, %v301_v22  ;;  %350 = vmatpush.msra.mxu1 %v332_v34 }
  0x24   : > { %281 = vmatpush.msra.mxu0 %v268_v6  ;;  %415 = vmatpush.msra.mxu2 %v399_v4  ;;  %v397_v6 = vld [vmem:[%s1022_s3 + $0x38] sm:$0xff] }
  0x25   : > { %v303_v24 = vadd.f32 %v642_v20, %v302_v23  ;;  %351 = vmatpush.msra.mxu1 %v331_v35 }
  0x26   : > { %282 = vmatpush.msra.mxu0 %v267_v7  ;;  %416 = vmatpush.msra.mxu2 %v398_v5  ;;  %v396_v7 = vld [vmem:[%s1022_s3 + $0x30] sm:$0xff] }
  0x27   : > { %v305_v25 = vsel %vm304_vm1, %v642_v20, %v303_v24  ;;  %352 = vmatpush.msra.mxu1 %v330_v36 }
  0x28   : > { %283 = vmatpush.msra.mxu0 %v266_v8  ;;  %417 = vmatpush.msra.mxu2 %v397_v6  ;;  %v395_v8 = vld [vmem:[%s1022_s3 + $0x28] sm:$0xff] }
  0x29   : > { %353 = vmatpush.msra.mxu1 %v329_v37 }
  0x2a   : > { %284 = vmatpush.msra.mxu0 %v265_v9  ;;  %418 = vmatpush.msra.mxu2 %v396_v7  ;;  %v394_v9 = vld [vmem:[%s1022_s3 + $0x20] sm:$0xff] }
  0x2b   : > { %354 = vmatpush.msra.mxu1 %v328_v38 }
  0x2c   : > { %285 = vmatpush.msra.mxu0 %v264_v10  ;;  %419 = vmatpush.msra.mxu2 %v395_v8  ;;  %v393_v10 = vld [vmem:[%s1022_s3 + $0x18] sm:$0xff] }
  0x2e   : > { %286 = vmatpush.msra.mxu0 %v263_v11  ;;  %420 = vmatpush.msra.mxu2 %v394_v9  ;;  %v392_v11 = vld [vmem:[%s1022_s3 + $0x10] sm:$0xff] }
  0x30   : > { %287 = vmatpush.msra.mxu0 %v262_v12  ;;  %421 = vmatpush.msra.mxu2 %v393_v10  ;;  %v391_v12 = vld [vmem:[%s1022_s3 + $0x8] sm:$0xff] }
  0x32   : > { %288 = vmatpush.msra.mxu0 %v261_v13  ;;  %422 = vmatpush.msra.mxu2 %v392_v11  ;;  %v390_v13 = vld [vmem:[%s1022_s3] sm:$0xff] }
  0x34   : > { %289 = vmatpush.msra.mxu0 %v260_v14  ;;  %423 = vmatpush.msra.mxu2 %v391_v12 }
  0x36   : > { %290 = vmatpush.msra.mxu0 %v259_v15  ;;  %424 = vmatpush.msra.mxu2 %v390_v13 }
  0x37   : > { %291 = vmatmul.f32.vlgmr.msra.gmra.mxu0 %v258_v16 }
  0xb4   : > { %v292_v17 = vpop.f32.mrf.mxu0 }
  0xb5   : > { %v296_v18 = vsel %vm295_vm0, %v292_v17, 0.0 }
  0xb6   : > { %297 = vadd.xlane.f32.xlu0 %v296_v18 }
 0x129   : > { %v298_v26 = vpop.xlane.xlu0 %297 }
 0x12a   : > { %v306_v27 = vmul.f32 %v305_v25, %v298_v26  ;;  %v640_v26 = vld [vmem:[%s1023_s4] ss:$0 sm:$0xff] }
 0x12c   : > { %v307_v28 = vsub.f32 %v292_v17, %v306_v27 }
 0x12e   : > { %v308_v29 = vmul.f32 %v307_v28, %v307_v28 }
 0x130   : > { %v309_v30 = vsel %vm295_vm0, %v308_v29, 0.0 }
 0x131   : > { %310 = vadd.xlane.f32.xlu0 %v309_v30 }
 0x1a4   : > { %v311_v39 = vpop.xlane.xlu0 %310 }
 0x1a5   : > { %v312_v40 = vmul.f32 %v311_v39, %v305_v25 }
 0x1a7   : > { %v313_v41 = vadd.f32 1e-05, %v312_v40 }
 0x1a9   : > { %643 = vrsqrt.f32 %v313_v41  ;;  %vm320_vm3 = vweird.f32 %v313_v41 }
 0x1aa   : > { %645 = vrcp.f32 %v750_v54 }
 0x1af   : > { %v644_v42 = vpop.eup %643 }
 0x1b0   : > { %v315_v43 = vmul.f32 %v644_v42, %v313_v41  ;;  %vm321_vm2 = vweird.f32 %v644_v42  ;;  %v646_v55 = vpop.eup %645 }
 0x1b1   : > { %vm322_vm4 = vmor %vm320_vm3, %vm321_vm2  ;;  %v364_v56 = vmul.f32 96.0, %v646_v55  ;;  %vm368_vm6 = vweird.f32 %v646_v55 }
 0x1b2   : > { %v316_v44 = vmul.f32 %v644_v42, %v315_v43 }
 0x1b3   : > { %v365_v57 = vsub.f32 1.0, %v364_v56 }
 0x1b4   : > { %v317_v45 = vmul.f32 0.5, %v316_v44 }
 0x1b5   : > { %v366_v58 = vmul.f32 %v646_v55, %v365_v57 }
 0x1b6   : > { %v318_v46 = vsub.f32 1.5, %v317_v45 }
 0x1b7   : > { %v367_v59 = vadd.f32 %v646_v55, %v366_v58 }
 0x1b8   : > { %v319_v47 = vmul.f32 %v644_v42, %v318_v46 }
 0x1b9   : > { %v369_v60 = vsel %vm368_vm6, %v646_v55, %v367_v59 }
 0x1ba   : > { %v323_v48 = vsel %vm322_vm4, %v644_v42, %v319_v47 }
 0x1bb   : > { %v324_v49 = vmul.f32 %v323_v48, %v307_v28 }
 0x1bd   : > { %v325_v50 = vmax.f32 %v324_v49, 0.0 }
 0x1bf   : > { %586 = vmatmul.msk.f32.vlgmr.msra.gmra.mxu1 %vm295_vm0, %v325_v50  ;;  %v326_v51 = vsel %vm295_vm0, %v325_v50, 0.0 }
 0x1c0   : > { %327 = vst [vmem:[%s921_s19] sm:$0xff] %v326_v51 }
 0x23c   : > { %v356_v52 = vpop.f32.mrf.mxu1 }
 0x23d   : > { %v360_v53 = vsel %vm359_vm5, %v356_v52, 0.0 }
 0x23e   : > { %361 = vadd.xlane.f32.xlu1 %v360_v53 }
 0x2b1   : > { %v362_v61 = vpop.xlane.xlu1 %361 }
 0x2b2   : > { %v370_v62 = vmul.f32 %v369_v60, %v362_v61 }
 0x2b4   : > { %v371_v63 = vsub.f32 %v356_v52, %v370_v62 }
 0x2b6   : > { %v372_v0 = vmul.f32 %v371_v63, %v371_v63 }
 0x2b8   : > { %v373_v1 = vsel %vm359_vm5, %v372_v0, 0.0 }
 0x2b9   : > { %374 = vadd.xlane.f32.xlu1 %v373_v1 }
 0x32c   : > { %v375_v14 = vpop.xlane.xlu1 %374 }
 0x32d   : > { %v376_v15 = vmul.f32 %v375_v14, %v369_v60 }
 0x32f   : > { %v377_v16 = vadd.f32 1e-05, %v376_v15 }
 0x331   : > { %647 = vrsqrt.f32 %v377_v16  ;;  %vm384_vm8 = vweird.f32 %v377_v16 }
 0x337   : > { %v648_v17 = vpop.eup %647 }
 0x338   : > { %v379_v18 = vmul.f32 %v648_v17, %v377_v16  ;;  %vm385_vm7 = vweird.f32 %v648_v17 }
 0x339   : > { %vm386_vm9 = vmor %vm384_vm8, %vm385_vm7 }
 0x33a   : > { %v380_v19 = vmul.f32 %v648_v17, %v379_v18 }
 0x33c   : > { %v381_v20 = vmul.f32 0.5, %v380_v19 }
 0x33e   : > { %v382_v21 = vsub.f32 1.5, %v381_v20 }
 0x340   : > { %v383_v22 = vmul.f32 %v648_v17, %v382_v21 }
 0x342   : > { %v387_v23 = vsel %vm386_vm9, %v648_v17, %v383_v22 }
 0x343   : > { %v388_v24 = vmul.f32 %v387_v23, %v371_v63 }
 0x345   : > { %v389_v25 = vmax.f32 %v388_v24, 0.0 }
 0x347   : > { %587 = vmatmul.msk.f32.vlgmr.msra.gmra.mxu2 %vm359_vm5, %v389_v25 }
 0x3ca   : > { %v426_v27 = vpop.f32.mrf.mxu2 }
 0x3cb   : > { %v427_v28 = vadd.f32 %v640_v26, %v426_v27 }
 0x3cd   : > { %429 = vmax.xlane.f32.xlu2 %v427_v28 }
 0x440   : > { %v430_v29 = vpop.xlane.xlu2 %429 }
 0x441   : > { %v431_v30 = vsub.f32 %v427_v28, %v430_v29 }
 0x443   : > { %v432_v31 = vmul.f32 1.442695, %v431_v30 }
 0x445   : > { %649 = vpow2.f32 %v432_v31 }
 0x44b   : > { %v650_v32 = vpop.eup %649 }
 0x44c   : > { %434 = vadd.xlane.f32.xlu2 %v650_v32 }
 0x44d   : > { %680 = shalt.err (!%p677_p3)
}
 0x44e   : > { %595 = dma.vmem_to_hbm [thread:$0]  (%p824_p5), %s485_s11, 128, %s487_s12, %s458_s13  }
 0x44f   : > { %s468_s19 = scalar_lea.hbm %s1024_s5, %s590_s28  ;;  %s1031_s29 = sshll.u32 %s914_s17, 3 }
 0x450   : > { %s246_s9 = scalar_lea.vmem [#allocation2], %s1031_s29  ;;  %s472_s11 = sshll.u32 %s468_s19, 4  ;;  %s473_s11 = int_to_ptr.hbm [resolvable:$true] %s472_s11 }
 0x451   : > { %s470_s10 = sshll.u32 %s246_s9, 4  ;;  %s453_s25 = scalar_lea.sflag [#allocation3], %s914_s17  ;;  %s471_s10 = int_to_ptr.vmem [resolvable:$true] %s470_s10 }
 0x452   : > { %s695_s12 = sshra.s32 %s473_s11, 4  ;;  %s701_s15 = scalar_lea.hbm %s1024_s5, 16  ;;  %s696_s12 = int_to_ptr.hbm [resolvable:$true] %s695_s12 }
 0x453   : > { %s697_s28 = scalar_lea.hbm %s696_s12, 8  ;;  %p702_p9 = scmp.lt.s32.totalorder %s696_s12, %s1024_s5 }
 0x454   : > { %p698_p4 = scmp.ne.s32.totalorder %s696_s12, %s697_s28  ;;  %p703_p10 = scmp.lt.s32.totalorder %s701_s15, %s697_s28 }
 0x456   : > { %p699_p7 = pnand %p698_p4, %p824_p5  ;;  %p704_p11 = por %p703_p10, %p702_p9 }
 0x458   : > { %p700_p8 = pneg %p699_p7 }
 0x45a   : > { %p705_p12 = pnand %p704_p11, %p700_p8 }
 0x4bf   : > { %v435_v33 = vpop.xlane.xlu2 %434 }
 0x4c0   : > { %651 = vrcp.f32 %v435_v33  ;;  %v447_v37 = vand.u32 2147483648, %v435_v33  ;;  %v445_v39 = vand.u32 2147483647, %v435_v33  ;;  %vm441_vm11 = vweird.f32 %v435_v33 }
 0x4c2   : > { %v448_v41 = vor.u32 1.1754944e-38, %v447_v37  ;;  %vm446_vm13 = vcmp.eq.f32.partialorder %v445_v39, 8.507059e+37 }
 0x4c6   : > { %v652_v34 = vpop.eup %651 }
 0x4c7   : > { %v437_v35 = vmul.f32 %v652_v34, %v435_v33  ;;  %vm442_vm10 = vweird.f32 %v652_v34 }
 0x4c8   : > { %vm443_vm12 = vmor %vm441_vm11, %vm442_vm10 }
 0x4c9   : > { %v438_v36 = vsub.f32 1.0, %v437_v35 }
 0x4cb   : > { %v439_v38 = vmul.f32 %v652_v34, %v438_v36 }
 0x4cd   : > { %v440_v40 = vadd.f32 %v652_v34, %v439_v38 }
 0x4cf   : > { %v444_v42 = vsel %vm443_vm12, %v652_v34, %v440_v40 }
 0x4d0   : > { %v449_v43 = vsel %vm446_vm13, %v448_v41, %v444_v42 }
 0x4d1   : > { %v450_v44 = vmul.f32 %v650_v32, %v449_v43 }
 0x4d3   : > { %451 = vst [vmem:[%s246_s9] sm:$0xff] %v450_v44 }
 0x4d4   : > { %708 = shalt.err (!%p705_p12)
}
 0x4d5   : > { %594 = dma.vmem_to_hbm [thread:$0]  (%p824_p5), %s471_s10, 128, %s473_s11, %s453_s25  }
 0x4d6 PF: > { %p605_p13 = scmp.ge.s32.totalorder %s747_s24, 2  ;;  %s498_s17 = sand.u32 1, %s735_s21  }
 0x4d7   : > { %s499_s26 = scalar_lea.sflag [#allocation3], %s498_s17 }
 0x4d8   : > { %p599_p0 = pnand %p605_p13, %p828_p6 }
 0x4da   : > { %p600_p1 = pneg %p599_p0 }
 0x4dc   : > { %726 = dma.done.wait (%p600_p1), %s499_s26, 128  }
 0x4dd   : > { %728 = vsyncadd (%p600_p1), %s499_s26, 4294967168  ;;  %s509_s0 = scalar_lea.sflag [#allocation5], %s498_s17 }
 0x4de   : > { %730 = dma.done.wait (%p600_p1), %s509_s0, 128  }
 0x4df   : > { %732 = vsyncadd (%p600_p1), %s509_s0, 4294967168  ;;  %p20_p5 = scmp.ge.s32.totalorder %s811_s27, 4   ;;  %s1032_s21 = smov %s739_s22 }
 0x4e0   : > { %s1033_s22 = smov %s743_s23  ;;  %s1034_s23 = smov %s822_s30 }
 0x4e1   : > { %s1035_s24 = smov %s811_s27  ;;  %22 = sbr.rel (!%p20_p5) target bundleno = 7 (0x7), region = 92 }
 0x4e6   :  { %515 = vsyncpa [#allocation3], 1 }
 0x4e7   :  { %517 = vsyncpa [#allocation3 + $0x1], 1 }
 0x4e8   :  { %518 = vsyncpa [#allocation5], 1 }
 0x4e9   :  { %520 = vsyncpa [#allocation5 + $0x1], 1 }

</bundles_post_ra>
